<compile_context>
chip_gen: v5e
topology: v5e:2x2
jax: 0.10.0
libtpu: 0.0.40
codegen_flags: <defaults>
</compile_context>

<pallas_src>
import jax
import jax.numpy as jnp
from jax import lax
from jax.experimental import pallas as pl
from jax.experimental.pallas import tpu as pltpu


_MAX_BATCH_TILE = 512   # batch rows per grid step once B grows past this


def _fm2l_kernel(x_ref, w_ref, b_ref, out_ref):
    # x_ref:  (Bt, K)   activations; batch on sublanes, K=C*H*W on lanes (lane-dense read)
    # w_ref:  (Z, K)    folded conv+fc weight (transposed)
    # b_ref:  (Z, 1)    folded bias, f32
    # out_ref:(Z, Bt)   latents; batch on lanes (lane-dense store)
    acc = lax.dot_general(
        w_ref[...], x_ref[...],
        dimension_numbers=(((1,), (1,)), ((), ())),      # (Z,K) @ (Bt,K)^T
        preferred_element_type=jnp.float32)              # (Z, Bt) f32 accumulation
    out_ref[...] = (acc + b_ref[...]).astype(out_ref.dtype)


def _fold_conv_fc(w_conv, b_conv, w_fc_eff, b_fc_eff, H, W):
    """Fold Conv2d(3x3, stride 1, pad 1, bias) + Flatten + FC into one affine map.

    Returns (w_total, b_total) with
        out[b, z] = sum_i x_flat[b, i] * w_total[i, z] + b_total[z]
    where i = c*H*W + h*W + w is the NCHW flatten index (PyTorch order).
    """
    c_out, c_in, kh_sz, kw_sz = w_conv.shape
    z_lat = w_fc_eff.shape[0]
    wfc_maps = w_fc_eff.reshape(z_lat, c_out, H, W).astype(jnp.float32)  # (z, o, h, w)

    # g[z, i, hp, wp] = weight of padded-input pixel (i, hp, wp) on latent z
    g = jnp.zeros((z_lat, c_in, H + 2, W + 2), jnp.float32)
    for kh in range(kh_sz):
        for kw in range(kw_sz):
            term = jnp.einsum('zohw,oi->zihw', wfc_maps,
                              w_conv[:, :, kh, kw].astype(jnp.float32))
            g = g.at[:, :, kh:kh + H, kw:kw + W].add(term)
    # strip the padding ring -> weight on the real input pixels
    w_total = g[:, :, 1:1 + H, 1:1 + W].reshape(z_lat, c_in * H * W).T    # (K, Z)
    b_total = (jnp.einsum('zohw,o->z', wfc_maps, b_conv.astype(jnp.float32))
               + b_fc_eff.astype(jnp.float32))                            # (Z,)
    return w_total, b_total


def _round_up(n, m):
    return ((n + m - 1) // m) * m


def fm2l_forward(x, w_conv, b_conv, w_fc_eff, b_fc_eff, *, mxu_dtype=jnp.bfloat16):
    """x: (B, Z, 4, 4) NCHW. Returns (B, Z) float32."""
    B, C, H, W = x.shape
    Z = w_fc_eff.shape[0]
    K = C * H * W

    w_total, b_total = _fold_conv_fc(w_conv, b_conv, w_fc_eff, b_fc_eff, H, W)
    w_t = w_total.T.astype(mxu_dtype)                   # (Z, K)  MXU operand
    b_col = b_total.reshape(Z, 1).astype(jnp.float32)   # (Z, 1)  f32 bias add
    x_flat = x.reshape(B, K).astype(mxu_dtype)          # (B, K)

    # Batch tiling: one block for small B, else 512-row tiles (zero-pad the tail).
    if B <= _MAX_BATCH_TILE:
        tile_b, b_pad = B, B
    else:
        tile_b = _MAX_BATCH_TILE
        b_pad = _round_up(B, tile_b)
        x_flat = jnp.pad(x_flat, ((0, b_pad - B), (0, 0)))

    # TODO(synk): for large Z, single-buffer the constant weight specs
    # (pipeline_mode=pl.Buffered(1)) and/or raise vmem_limit_bytes to avoid
    # v7x VMEM pressure; unnecessary at these sizes.
    out_t = pl.pallas_call(
        _fm2l_kernel,
        out_shape=jax.ShapeDtypeStruct((Z, b_pad), jnp.float32),
        grid_spec=pltpu.PrefetchScalarGridSpec(
            num_scalar_prefetch=0,
            grid=(b_pad // tile_b,),
            in_specs=[
                pl.BlockSpec((tile_b, K), lambda i: (i, 0)),   # activations
                pl.BlockSpec((Z, K), lambda i: (0, 0)),        # folded weight
                pl.BlockSpec((Z, 1), lambda i: (0, 0)),        # folded bias
            ],
            out_specs=pl.BlockSpec((Z, tile_b), lambda i: (0, i)),
        ),
        compiler_params=pltpu.CompilerParams(
            dimension_semantics=("parallel",)),
    )(x_flat, w_t, b_col)

    return out_t[:, :B].T                               # (B, Z) float32


def _reference_forward(x, w_conv, b_conv, w_fc_eff, b_fc_eff):
    y = lax.conv_general_dilated(
        x, w_conv, window_strides=(1, 1), padding=((1, 1), (1, 1)),
        dimension_numbers=("NCHW", "OIHW", "NCHW"))
    y = y + b_conv[None, :, None, None]
    flat = y.reshape(x.shape[0], -1)
    return flat @ w_fc_eff.T + b_fc_eff


if __name__ == "__main__":
    B, Z, H, W = 2, 8, 4, 4   # z_dims = 8; fc input = Z * 16

    key = jax.random.PRNGKey(0)
    kx, kwc, kbc, kwf = jax.random.split(key, 4)

    x = jax.random.normal(kx, (B, Z, H, W), dtype=jnp.float32)

    # Conv2d(Z, Z, 3, padding=1) params (deterministic synthetic init)
    w_conv = 0.1 * jax.random.normal(kwc, (Z, Z, 3, 3), dtype=jnp.float32)
    b_conv = 0.1 * jax.random.normal(kbc, (Z,), dtype=jnp.float32)

    # FullyConnectedLayer(Z*16, Z, activation='linear', lr_multiplier=1):
    #   weight ~ randn / lr_mult, runtime gain = lr_mult / sqrt(in_features); bias init 0
    in_features = Z * H * W
    w_fc_raw = jax.random.normal(kwf, (Z, in_features), dtype=jnp.float32)
    w_fc_eff = w_fc_raw * (1.0 / jnp.sqrt(jnp.float32(in_features)))
    b_fc_eff = jnp.zeros((Z,), dtype=jnp.float32)

    ref = _reference_forward(x, w_conv, b_conv, w_fc_eff, b_fc_eff)

    # f32 MXU operands: tight semantics check against the conv+fc reference.
    out_f32 = jax.block_until_ready(
        fm2l_forward(x, w_conv, b_conv, w_fc_eff, b_fc_eff, mxu_dtype=jnp.float32))
    assert out_f32.shape == (B, Z)
    assert jnp.allclose(out_f32, ref, rtol=1e-4, atol=1e-4), (out_f32, ref)

    # bf16 MXU operands, f32 accumulation (v6e/v7x fast path).
    out_bf16 = jax.block_until_ready(
        fm2l_forward(x, w_conv, b_conv, w_fc_eff, b_fc_eff, mxu_dtype=jnp.bfloat16))
    assert out_bf16.shape == (B, Z)
    assert jnp.allclose(out_bf16, ref, rtol=3e-2, atol=3e-2), (out_bf16, ref)

    print("KERNEL_OK")
</pallas_src>

<mosaic_0001>
module attributes {stable_mosaic.version = 11 : i64} {
  func.func @_fm2l_kernel(%arg0: i32, %arg1: memref<2x128xf32, #tpu.memory_space<vmem>>, %arg2: memref<8x128xf32, #tpu.memory_space<vmem>>, %arg3: memref<8x1xf32, #tpu.memory_space<vmem>>, %arg4: memref<8x2xf32, #tpu.memory_space<vmem>>) attributes {dimension_semantics = [#tpu.dimension_semantics<parallel>], iteration_bounds = array<i64: 1>, scalar_prefetch = 0 : i64, scratch_operands = 0 : i64, tpu.core_type = #tpu.core_type<tc>, window_params = [{transform_indices = @transform_0, window_bounds = array<i64: 2, 128>}, {pipeline_mode = #tpu.pipeline_mode<synchronous>, transform_indices = @transform_1, window_bounds = array<i64: 8, 128>}, {pipeline_mode = #tpu.pipeline_mode<synchronous>, transform_indices = @transform_2, window_bounds = array<i64: 8, 1>}, {transform_indices = @transform_3, window_bounds = array<i64: 8, 2>}]} {
    %c0 = arith.constant 0 : index
    %c0_0 = arith.constant 0 : index
    %0 = vector.load %arg2[%c0, %c0_0] : memref<8x128xf32, #tpu.memory_space<vmem>>, vector<8x128xf32>
    %c0_1 = arith.constant 0 : index
    %c0_2 = arith.constant 0 : index
    %1 = vector.load %arg1[%c0_1, %c0_2] : memref<2x128xf32, #tpu.memory_space<vmem>>, vector<2x128xf32>
    %cst = arith.constant dense<0.000000e+00> : vector<8x2xf32>
    %2 = tpu.matmul %0, %1, %cst {dimension_numbers = #tpu.dot_dimension_numbers<[1], [1], [0], [0], [0, 0, 1, 0], [], []>} : vector<8x128xf32>, vector<2x128xf32>, vector<8x2xf32> -> vector<8x2xf32>
    %c0_3 = arith.constant 0 : index
    %c0_4 = arith.constant 0 : index
    %3 = vector.load %arg3[%c0_3, %c0_4] : memref<8x1xf32, #tpu.memory_space<vmem>>, vector<8x1xf32>
    %4 = vector.broadcast %3 : vector<8x1xf32> to vector<8x2xf32>
    %5 = arith.addf %2, %4 : vector<8x2xf32>
    %c0_5 = arith.constant 0 : index
    %c0_6 = arith.constant 0 : index
    %6 = vector.load %arg4[%c0_5, %c0_6] : memref<8x2xf32, #tpu.memory_space<vmem>>, vector<8x2xf32>
    tpu.vector_store %arg4[%c0_5, %c0_6], %5 {strides = array<i32>} : memref<8x2xf32, #tpu.memory_space<vmem>>, vector<8x2xf32>,
    return
  }
  func.func @transform_0(%arg0: i32) -> (i32, i32) {
    %c0_i32 = arith.constant 0 : i32
    %c0_i32_0 = arith.constant 0 : i32
    return %arg0, %c0_i32 : i32, i32
  }
  func.func @transform_1(%arg0: i32) -> (i32, i32) {
    %c0_i32 = arith.constant 0 : i32
    %c0_i32_0 = arith.constant 0 : i32
    %c0_i32_1 = arith.constant 0 : i32
    return %c0_i32, %c0_i32_0 : i32, i32
  }
  func.func @transform_2(%arg0: i32) -> (i32, i32) {
    %c0_i32 = arith.constant 0 : i32
    %c0_i32_0 = arith.constant 0 : i32
    %c0_i32_1 = arith.constant 0 : i32
    return %c0_i32, %c0_i32_0 : i32, i32
  }
  func.func @transform_3(%arg0: i32) -> (i32, i32) {
    %c0_i32 = arith.constant 0 : i32
    %c0_i32_0 = arith.constant 0 : i32
    return %c0_i32, %arg0 : i32, i32
  }
}

</mosaic_0001>

<bundles_post_ra>
// kernel: tpu_custom_call.1
= control target key start
LH: loop header
LB: loop body
LE: loop exit
PB: predicated region body
PF: predicated region fallthrough
CT: control target
= control target key end

     0   :  { %8 = vsyncpa [#allocation3], 0  ;;  %s92_s15 = smov [#allocation2]   ;;  %s126_s0 = inlined_call_operand.hbm [shape: f32[2,128], index: 0, kind: input, shape index: {}]   ;;  %s127_s1 = inlined_call_operand.vmem [shape: f32[8,128], index: 1, kind: input, shape index: {}]   ;;  %s128_s2 = inlined_call_operand.vmem [shape: f32[8,1], index: 2, kind: input, shape index: {}]   ;;  %s129_s3 = inlined_call_operand.vmem [shape: f32[8,2], index: 3, kind: output, shape index: {}]  }
   0x1   :  { %s14_s14 = sshll.u32 %s126_s0, 4  ;;  %s16_s16 = sshll.u32 %s92_s15, 4  ;;  %s15_s14 = int_to_ptr.hbm [resolvable:$true] %s14_s14  ;;  %s17_s16 = int_to_ptr.vmem [resolvable:$true] %s16_s16 }
   0x2   :  { %19 = dma.hbm_to_vmem [thread:$0]  %s15_s14, 32, %s17_s16, [#allocation3]  }
   0x3   :  { %90 = dma.done.wait [#allocation3], 32  }
   0x4   :  { %91 = vsyncadd [#allocation3], 4294967264  ;;  %v93_v0 = vmov 0   ;;  %v29_v1 = vld [vmem:[#allocation2] sm:$0x3]  ;;  %vm56_vm0 = vcmask 15360  }
   0x5   :  { %65 = vset.pattern.permute.xlu0 %v93_v0  ;;  %v30_v2 = vld [vmem:[%s128_s2] sm:$0xff]  ;;  %51 = vmatpush.xpose.msra.mxu0 %v29_v1 }
   0x6   :  { %v28_v3 = vld [vmem:[%s127_s1] sm:$0xff]  ;;  %33 = vperm.xlu0 %65, %v30_v2  }
   0x8   :  { %52 = vmatmul.f32.vlgmr.msra.gmra.mxu0 %v28_v3 }
  0x78   :  { %v34_v4 = vpop.permute.xlu0 %33 }
  0x85   :  { %v53_v5 = vpop.f32.mrf.mxu0 }
  0x86   :  { %v54_v6 = vadd.f32 %v53_v5, %v34_v4 }
  0x88   :  { %57 = vst.msk [vmem:[%s129_s3] sm:$0xff] %vm56_vm0, %v54_v6 }
  0x89   :  { %62 = vsyncpa [#allocation3], 1 }

</bundles_post_ra>
